<compile_context>
chip_gen: v5e
topology: v5e:2x2
jax: 0.10.0
libtpu: 0.0.40
codegen_flags: <defaults>
</compile_context>

<pallas_src>
import functools

import jax
import jax.numpy as jnp
from jax.experimental import pallas as pl
from jax.experimental.pallas import tpu as pltpu


def _round_up(x, m):
    return ((x + m - 1) // m) * m


# ----------------------------------------------------------------------------
# Generation-aware tile / VMEM budget.
# ----------------------------------------------------------------------------
def _vmem_capacity_bytes():
    try:
        info = pltpu.get_tpu_info()
        for attr in ("vmem_capacity_bytes", "vmem_size_bytes", "vmem_bytes"):
            v = getattr(info, attr, None)
            if v:
                return int(v)
    except Exception:
        pass
    return 64 * 1024 * 1024          # conservative (v7x-sized) default


_VMEM_CAP = _vmem_capacity_bytes()
if _VMEM_CAP >= 96 * 1024 * 1024:    # v5e / v6e: 128 MiB physical VMEM
    _TM_IM2COL = 2048
    _TM_DIRECT = 1024
    _VMEM_LIMIT = 64 * 1024 * 1024
else:                                # v7x: 64 MiB physical VMEM
    _TM_IM2COL = 1024
    _TM_DIRECT = 1024
    _VMEM_LIMIT = 48 * 1024 * 1024


# ----------------------------------------------------------------------------
# Kernel 1: fused (im2col-matmul + shift + LeakyReLU), stride-2 layers.
# ----------------------------------------------------------------------------
def _matmul_affine_act_kernel(patches_ref, w_ref, shift_ref, out_ref,
                              *, neg_slope):
    # patches: (tm, Kp) bf16   w: (Kp, Cp) bf16 (scale pre-folded)
    # shift:   (1, Cp) f32     out: (tm, Cp) bf16
    acc = jnp.dot(patches_ref[...], w_ref[...],
                  preferred_element_type=jnp.float32)
    acc = acc + shift_ref[...]
    if neg_slope != 1.0:      # final conv has no activation -> specialized away
        acc = jnp.where(acc >= 0, acc, neg_slope * acc)
    out_ref[...] = acc.astype(out_ref.dtype)


def _conv2x2_im2col(x_nhwc, w_oihw, stride, scale, shift, neg_slope,
                    *, tm_target):
    """2x2 conv, padding=1, given stride, via bf16 im2col + fused kernel."""
    N, H, W, Cin = x_nhwc.shape
    Cout = w_oihw.shape[0]
    Hout = (H + 2 - 2) // stride + 1
    Wout = (W + 2 - 2) // stride + 1
    M = N * Hout * Wout
    K = 4 * Cin

    xp = jnp.pad(x_nhwc.astype(jnp.bfloat16), ((0, 0), (1, 1), (1, 1), (0, 0)))
    cols = []
    for ky in range(2):
        for kx in range(2):
            cols.append(xp[:,
                           ky: ky + (Hout - 1) * stride + 1: stride,
                           kx: kx + (Wout - 1) * stride + 1: stride,
                           :])
    patches = jnp.concatenate(cols, axis=-1).reshape(M, K)

    # Alignment: lane-dense Cout; small K (layer 0: 12) only rounded to the
    # bf16 sublane quantum (16), not 128; M/tm rounded to multiples of 16.
    Kp = _round_up(K, 128) if K >= 128 else _round_up(K, 16)
    Cp = _round_up(Cout, 128)
    tm = min(tm_target, _round_up(M, 16))
    grid_m = -(-M // tm)
    Mp = grid_m * tm

    patches = jnp.pad(patches, ((0, Mp - M), (0, Kp - K)))

    # (Cout, Cin, kh, kw) -> (kh, kw, Cin, Cout) matrix, scale folded in f32.
    w_mat = jnp.transpose(w_oihw.astype(jnp.float32), (2, 3, 1, 0)).reshape(K, Cout)
    w_mat = w_mat * scale.astype(jnp.float32)
    w_mat = jnp.pad(w_mat, ((0, Kp - K), (0, Cp - Cout))).astype(jnp.bfloat16)
    shift_p = jnp.pad(shift.astype(jnp.float32), (0, Cp - Cout)).reshape(1, Cp)

    cost = pl.CostEstimate(
        flops=2 * M * K * Cout,
        transcendentals=0,
        bytes_accessed=M * K * 2 + K * Cout * 2 + Cout * 4 + M * Cout * 2)

    out_flat = pl.pallas_call(
        functools.partial(_matmul_affine_act_kernel, neg_slope=neg_slope),
        out_shape=jax.ShapeDtypeStruct((Mp, Cp), jnp.bfloat16),
        grid_spec=pltpu.PrefetchScalarGridSpec(
            num_scalar_prefetch=0,
            grid=(grid_m,),
            in_specs=[
                pl.BlockSpec((tm, Kp), lambda i: (i, 0)),   # patches: tiled
                pl.BlockSpec((Kp, Cp), lambda i: (0, 0)),   # weights: invariant
                pl.BlockSpec((1, Cp), lambda i: (0, 0)),    # shift:   invariant
            ],
            out_specs=pl.BlockSpec((tm, Cp), lambda i: (i, 0)),
        ),
        compiler_params=pltpu.CompilerParams(
            dimension_semantics=("parallel",),
            vmem_limit_bytes=_VMEM_LIMIT),
        cost_estimate=cost,
    )(patches, w_mat, shift_p)

    return out_flat[:M, :Cout].reshape(N, Hout, Wout, Cout)


# ----------------------------------------------------------------------------
# Kernel 2: stride-1 2x2 conv without im2col (manual DMA of shifted windows).
# ----------------------------------------------------------------------------
def _direct_s1_kernel(xflat_hbm, w_ref, shift_ref, out_ref, quad, sems,
                      *, offsets, neg_slope):
    # xflat_hbm: (rows_padded, Cin) bf16 in HBM -- padded NHWC activation
    #            flattened over (N, H+2, W+2).
    # w_ref:     (4, Cin, Cp) bf16, k = ky*2+kx, scale pre-folded.
    # out_ref:   (R, Cp) bf16 -- R flat output positions of this grid step.
    r_rows = out_ref.shape[0]
    base = pl.multiple_of(pl.program_id(0) * r_rows, 16)

    copies = []
    for k, off in enumerate(offsets):      # offsets = (0, 1, Wp, Wp+1), static
        c = pltpu.make_async_copy(xflat_hbm.at[pl.ds(base + off, r_rows)],
                                  quad.at[k], sems.at[k])
        c.start()
        copies.append(c)
    for c in copies:
        c.wait()
    # TODO(synk): fetch a single (R + W + 3)-row haloed slab and derive the
    # four shifts in-kernel (and double-buffer it across grid steps) to cut the
    # overlapping HBM reads from ~4x to ~1x.

    acc = jnp.dot(quad[0], w_ref[0], preferred_element_type=jnp.float32)
    for k in range(1, 4):
        acc = acc + jnp.dot(quad[k], w_ref[k],
                            preferred_element_type=jnp.float32)
    acc = acc + shift_ref[...]
    if neg_slope != 1.0:
        acc = jnp.where(acc >= 0, acc, neg_slope * acc)
    out_ref[...] = acc.astype(out_ref.dtype)


def _conv2x2_s1_direct(x_nhwc, w_oihw, scale, shift, neg_slope, *, tm_target):
    """2x2 conv, padding=1, stride=1, without the 4x im2col duplication."""
    N, H, W, Cin = x_nhwc.shape
    Cout = w_oihw.shape[0]
    Hp, Wp = H + 2, W + 2
    Hout, Wout = H + 1, W + 1
    rows = N * Hp * Wp                       # all flat padded positions
    Cp = _round_up(Cout, 128)

    xflat = jnp.pad(x_nhwc.astype(jnp.bfloat16),
                    ((0, 0), (1, 1), (1, 1), (0, 0))).reshape(rows, Cin)

    R = min(tm_target, _round_up(rows, 16))
    grid_m = -(-rows // R)
    halo = Wp + 1                            # largest (ky,kx) flat offset
    rows_padded = grid_m * R + halo
    xflat = jnp.pad(xflat, ((0, rows_padded - rows), (0, 0)))

    offsets = (0, 1, Wp, Wp + 1)             # (ky, kx) -> ky*Wp + kx

    # (Cout, Cin, kh, kw) -> (k, Cin, Cout), scale folded in f32, lane-dense Cout.
    w4 = jnp.transpose(w_oihw.astype(jnp.float32), (2, 3, 1, 0))
    w4 = (w4 * scale.astype(jnp.float32)).reshape(4, Cin, Cout)
    w4 = jnp.pad(w4, ((0, 0), (0, 0), (0, Cp - Cout))).astype(jnp.bfloat16)
    shift_p = jnp.pad(shift.astype(jnp.float32), (0, Cp - Cout)).reshape(1, Cp)

    cost = pl.CostEstimate(
        flops=2 * N * Hout * Wout * (4 * Cin) * Cout,
        transcendentals=0,
        bytes_accessed=(rows * Cin * 2 + 4 * Cin * Cout * 2
                        + N * Hout * Wout * Cout * 2))

    out_flat = pl.pallas_call(
        functools.partial(_direct_s1_kernel, offsets=offsets,
                          neg_slope=neg_slope),
        out_shape=jax.ShapeDtypeStruct((grid_m * R, Cp), jnp.bfloat16),
        grid_spec=pltpu.PrefetchScalarGridSpec(
            num_scalar_prefetch=0,
            grid=(grid_m,),
            in_specs=[
                pl.BlockSpec(memory_space=pl.ANY),               # activation (HBM)
                pl.BlockSpec((4, Cin, Cp), lambda i: (0, 0, 0)),  # weights
                pl.BlockSpec((1, Cp), lambda i: (0, 0)),          # shift
            ],
            out_specs=pl.BlockSpec((R, Cp), lambda i: (i, 0)),
            scratch_shapes=[
                pltpu.VMEM((4, R, Cin), jnp.bfloat16),            # shifted windows
                pltpu.SemaphoreType.DMA((4,)),
            ]),
        compiler_params=pltpu.CompilerParams(
            dimension_semantics=("arbitrary",),
            vmem_limit_bytes=_VMEM_LIMIT),
        cost_estimate=cost,
    )(xflat, w4, shift_p)

    # Keep only the valid flat positions (drop row-wrap / tail garbage).
    out = out_flat[:rows, :Cout].reshape(N, Hp, Wp, Cout)
    return out[:, :Hout, :Wout, :]


def _conv2x2_fused(x_nhwc, w_oihw, stride, scale, shift, neg_slope):
    if stride == 1 and x_nhwc.shape[-1] % 128 == 0:
        return _conv2x2_s1_direct(x_nhwc, w_oihw, scale, shift, neg_slope,
                                  tm_target=_TM_DIRECT)
    return _conv2x2_im2col(x_nhwc, w_oihw, stride, scale, shift, neg_slope,
                           tm_target=_TM_IM2COL)


# ----------------------------------------------------------------------------
# Parameter construction (deterministic, synthetic)
# ----------------------------------------------------------------------------
def init_params(key, input_nc=3, ndf=64, n_layers=3):
    params = []
    chans = [input_nc, ndf]
    nf_mult = 1
    for n in range(1, n_layers):
        nf_mult = min(2 ** n, 8)
        chans.append(ndf * nf_mult)
    nf_mult = min(2 ** n_layers, 8)
    chans.append(ndf * nf_mult)
    chans.append(1)

    strides = [2] * n_layers + [1, 1]
    eps = 1e-5

    for li in range(len(chans) - 1):
        cin, cout = chans[li], chans[li + 1]
        key, kw_, kb_, kg_, kbe_, km_, kv_ = jax.random.split(key, 7)
        w = 0.02 * jax.random.normal(kw_, (cout, cin, 2, 2), jnp.float32)

        first = (li == 0)
        last = (li == len(chans) - 2)
        if first or last:
            # conv with bias, no batchnorm
            b = 0.02 * jax.random.normal(kb_, (cout,), jnp.float32)
            scale = jnp.ones((cout,), jnp.float32)
            shift = b
            slope = 0.2 if first else 1.0       # last conv: no activation
        else:
            # conv (no bias) + eval-mode BatchNorm folded to scale/shift
            gamma = 1.0 + 0.1 * jax.random.normal(kg_, (cout,), jnp.float32)
            beta = 0.1 * jax.random.normal(kbe_, (cout,), jnp.float32)
            rmean = 0.1 * jax.random.normal(km_, (cout,), jnp.float32)
            rvar = 1.0 + 0.1 * jnp.abs(jax.random.normal(kv_, (cout,), jnp.float32))
            scale = gamma / jnp.sqrt(rvar + eps)
            shift = beta - rmean * scale
            slope = 0.2

        params.append(dict(w=w, scale=scale, shift=shift,
                           stride=strides[li], slope=slope))
    return params


# ----------------------------------------------------------------------------
# Forward pass (NCHW in / NCHW out, like PyTorch)
# ----------------------------------------------------------------------------
def nlayer_discriminator_forward(x_nchw, params):
    x = x_nchw.astype(jnp.float32)                 # input.type(torch.float32)
    x = jnp.transpose(x, (0, 2, 3, 1))             # NCHW -> NHWC
    for p in params:
        x = _conv2x2_fused(x, p["w"], p["stride"], p["scale"], p["shift"],
                           p["slope"])
    return jnp.transpose(x, (0, 3, 1, 2)).astype(jnp.float32)   # NHWC -> NCHW


# ----------------------------------------------------------------------------
# Pure-JAX reference (lax.conv) for a sanity check
# ----------------------------------------------------------------------------
def _reference_forward(x_nchw, params):
    x = x_nchw.astype(jnp.float32)
    for p in params:
        x = jax.lax.conv_general_dilated(
            x, p["w"], (p["stride"], p["stride"]), ((1, 1), (1, 1)),
            dimension_numbers=("NCHW", "OIHW", "NCHW"))
        x = x * p["scale"][None, :, None, None] + p["shift"][None, :, None, None]
        x = jnp.where(x >= 0, x, p["slope"] * x)
    return x


if __name__ == "__main__":
    key = jax.random.PRNGKey(0)
    kx, kp = jax.random.split(key)

    # Small but consistent with the module: N=2, C=3 (input_nc), 16x16 spatial.
    x = jax.random.normal(kx, (2, 3, 16, 16), jnp.float32)
    params = init_params(kp)

    out = nlayer_discriminator_forward(x, params)
    out = jax.block_until_ready(out)

    # Expected output spatial trace for 16x16 input: 16->9->5->3->4->5, C=1.
    assert out.shape == (2, 1, 5, 5), out.shape

    ref = jax.block_until_ready(_reference_forward(x, params))
    # bf16 activations/weights (f32 accumulation) -> small deviation vs f32 ref.
    assert jnp.allclose(out, ref, rtol=5e-2, atol=5e-2), (
        float(jnp.max(jnp.abs(out - ref))))

    print("KERNEL_OK")
</pallas_src>

<mosaic_0001>
module attributes {stable_mosaic.version = 11 : i64} {
  func.func @_matmul_affine_act_kernel(%arg0: i32, %arg1: memref<176x16xbf16, #tpu.memory_space<vmem>>, %arg2: memref<16x128xbf16, #tpu.memory_space<vmem>>, %arg3: memref<1x128xf32, #tpu.memory_space<vmem>>, %arg4: memref<176x128xbf16, #tpu.memory_space<vmem>>) attributes {dimension_semantics = [#tpu.dimension_semantics<parallel>], iteration_bounds = array<i64: 1>, scalar_prefetch = 0 : i64, scratch_operands = 0 : i64, tpu.core_type = #tpu.core_type<tc>, window_params = [{transform_indices = @transform_0, window_bounds = array<i64: 176, 16>}, {pipeline_mode = #tpu.pipeline_mode<synchronous>, transform_indices = @transform_1, window_bounds = array<i64: 16, 128>}, {pipeline_mode = #tpu.pipeline_mode<synchronous>, transform_indices = @transform_2, window_bounds = array<i64: 1, 128>}, {transform_indices = @transform_3, window_bounds = array<i64: 176, 128>}]} {
    %c0 = arith.constant 0 : index
    %c0_0 = arith.constant 0 : index
    %0 = vector.load %arg1[%c0, %c0_0] : memref<176x16xbf16, #tpu.memory_space<vmem>>, vector<176x16xbf16>
    %c0_1 = arith.constant 0 : index
    %c0_2 = arith.constant 0 : index
    %1 = vector.load %arg2[%c0_1, %c0_2] : memref<16x128xbf16, #tpu.memory_space<vmem>>, vector<16x128xbf16>
    %cst = arith.constant dense<0.000000e+00> : vector<176x128xf32>
    %2 = tpu.matmul %0, %1, %cst {dimension_numbers = #tpu.dot_dimension_numbers<[1], [0], [0], [1], [0, 0, 1, 1], [], []>} : vector<176x16xbf16>, vector<16x128xbf16>, vector<176x128xf32> -> vector<176x128xf32>
    %c0_3 = arith.constant 0 : index
    %c0_4 = arith.constant 0 : index
    %3 = vector.load %arg3[%c0_3, %c0_4] : memref<1x128xf32, #tpu.memory_space<vmem>>, vector<1x128xf32>
    %4 = vector.broadcast %3 : vector<1x128xf32> to vector<176x128xf32>
    %5 = arith.addf %2, %4 : vector<176x128xf32>
    %cst_5 = arith.constant 0.000000e+00 : f32
    %6 = vector.broadcast %cst_5 : f32 to vector<176x128xf32>
    %7 = arith.cmpf oge, %5, %6 : vector<176x128xf32>
    %cst_6 = arith.constant 2.000000e-01 : f32
    %8 = vector.broadcast %cst_6 : f32 to vector<176x128xf32>
    %9 = arith.mulf %8, %5 : vector<176x128xf32>
    %10 = arith.select %7, %5, %9 : vector<176x128xi1>, vector<176x128xf32>
    %11 = arith.truncf %10 : vector<176x128xf32> to vector<176x128xbf16>
    %c0_7 = arith.constant 0 : index
    %c0_8 = arith.constant 0 : index
    %12 = vector.load %arg4[%c0_7, %c0_8] : memref<176x128xbf16, #tpu.memory_space<vmem>>, vector<176x128xbf16>
    tpu.vector_store %arg4[%c0_7, %c0_8], %11 {strides = array<i32>} : memref<176x128xbf16, #tpu.memory_space<vmem>>, vector<176x128xbf16>,
    return
  }
  func.func @transform_0(%arg0: i32) -> (i32, i32) {
    %c0_i32 = arith.constant 0 : i32
    %c0_i32_0 = arith.constant 0 : i32
    return %arg0, %c0_i32 : i32, i32
  }
  func.func @transform_1(%arg0: i32) -> (i32, i32) {
    %c0_i32 = arith.constant 0 : i32
    %c0_i32_0 = arith.constant 0 : i32
    %c0_i32_1 = arith.constant 0 : i32
    return %c0_i32, %c0_i32_0 : i32, i32
  }
  func.func @transform_2(%arg0: i32) -> (i32, i32) {
    %c0_i32 = arith.constant 0 : i32
    %c0_i32_0 = arith.constant 0 : i32
    %c0_i32_1 = arith.constant 0 : i32
    return %c0_i32, %c0_i32_0 : i32, i32
  }
  func.func @transform_3(%arg0: i32) -> (i32, i32) {
    %c0_i32 = arith.constant 0 : i32
    %c0_i32_0 = arith.constant 0 : i32
    return %arg0, %c0_i32 : i32, i32
  }
}

</mosaic_0001>

<bundles_post_ra>
// kernel: tpu_custom_call.1
= control target key start
LH: loop header
LB: loop body
LE: loop exit
PB: predicated region body
PF: predicated region fallthrough
CT: control target
= control target key end

     0   :  { %vm105_vm0 = vcmask 130048   ;;  %s600_s0 = inlined_call_operand.vmem [shape: bf16[176,16], index: 0, kind: input, shape index: {}]   ;;  %s601_s1 = inlined_call_operand.vmem [shape: bf16[16,128], index: 1, kind: input, shape index: {}]   ;;  %s602_s2 = inlined_call_operand.vmem [shape: f32[1,128], index: 2, kind: input, shape index: {}]   ;;  %s603_s3 = inlined_call_operand.hbm [shape: bf16[176,128], index: 3, kind: output, shape index: {}]  }
   0x1   :  { %v401_v0 = vld [vmem:[%s601_s1] sm:$0xff]  ;;  %v393_v2 = vld [vmem:[%s600_s0 + $0x18] sm:$0xff]  ;;  %v396_v3 = vld [vmem:[%s600_s0 + $0x30] sm:$0xff] }
   0x2   :  { %v390_v1 = vld [vmem:[%s600_s0] sm:$0xff]  ;;  %146 = vmatpush.bf16.msra.mxu0 %v401_v0  ;;  %467 = vmatpush.bf16.msra.mxu1 %v401_v0  ;;  %v399_v4 = vld [vmem:[%s600_s0 + $0x48] sm:$0xff] }
   0x3   :  { %468 = vmatpush.bf16.msra.mxu2 %v401_v0  ;;  %469 = vmatpush.bf16.msra.mxu3 %v401_v0 }
   0x4   :  { %8 = vsyncpa [#allocation3], 0  ;;  %v391_v5 = vld [vmem:[%s600_s0 + $0x8] sm:$0xff]  ;;  %v394_v6 = vld [vmem:[%s600_s0 + $0x20] sm:$0xff]  ;;  %s319_s12 = sshll.u32 %s603_s3, 4  ;;  %s501_s13 = smov 64   ;;  %s320_s12 = int_to_ptr.hbm [resolvable:$true] %s319_s12 }
   0x5   :  { %379 = vmatmul.msk.bf16.vlgmr.msra.gmra.mxu0 %vm105_vm0, %v390_v1  ;;  %382 = vmatmul.msk.bf16.vlgmr.msra.gmra.mxu1 %vm105_vm0, %v393_v2  ;;  %v397_v7 = vld [vmem:[%s600_s0 + $0x38] sm:$0xff]  ;;  %v400_v8 = vld [vmem:[%s600_s0 + $0x50] sm:$0xff]  ;;  %v395_v10 = vld [vmem:[%s600_s0 + $0x28] sm:$0xff]  ;;  %s502_s14 = smov 4  }
   0x6   :  { %385 = vmatmul.msk.bf16.vlgmr.msra.gmra.mxu2 %vm105_vm0, %v396_v3  ;;  %388 = vmatmul.msk.bf16.vlgmr.msra.gmra.mxu3 %vm105_vm0, %v399_v4  ;;  %v392_v9 = vld [vmem:[%s600_s0 + $0x10] sm:$0xff]  ;;  %v398_v11 = vld [vmem:[%s600_s0 + $0x40] sm:$0xff]  ;;  %s500_s0 = smov [#allocation2]  }
   0x7   :  { %v573_v12 = vld [vmem:[%s602_s2] ss:$0 sm:$0xff]  ;;  %s317_s2 = sshll.u32 %s500_s0, 4  ;;  %s318_s2 = int_to_ptr.vmem [resolvable:$true] %s317_s2 }
  0x15   :  { %380 = vmatmul.msk.bf16.gmra.mxu0 %vm105_vm0, %v391_v5  ;;  %383 = vmatmul.msk.bf16.gmra.mxu1 %vm105_vm0, %v394_v6 }
  0x16   :  { %386 = vmatmul.msk.bf16.gmra.mxu2 %vm105_vm0, %v397_v7  ;;  %389 = vmatmul.msk.bf16.gmra.mxu3 %vm105_vm0, %v400_v8 }
  0x25   :  { %381 = vmatmul.msk.bf16.gmra.mxu0 %vm105_vm0, %v392_v9  ;;  %384 = vmatmul.msk.bf16.gmra.mxu1 %vm105_vm0, %v395_v10 }
  0x26   :  { %387 = vmatmul.msk.bf16.gmra.mxu2 %vm105_vm0, %v398_v11 }
  0x82   :  { %v148_v13 = vpop.f32.mrf.mxu0  ;;  %v163_v14 = vpop.f32.mrf.mxu1 }
  0x83   :  { %v149_v15 = vadd.f32 %v573_v12, %v148_v13  ;;  %v164_v16 = vadd.f32 %v573_v12, %v163_v14 }
  0x85   :  { %vm203_vm1 = vcmp.ge.f32.partialorder %v149_v15, 0.0  ;;  %v225_v19 = vmul.f32 0.2, %v149_v15  ;;  %v231_v22 = vmul.f32 0.2, %v164_v16  ;;  %vm209_vm2 = vcmp.ge.f32.partialorder %v164_v16, 0.0 }
  0x87   :  { %v247_v28 = vsel %vm203_vm1, %v149_v15, %v225_v19  ;;  %v253_v30 = vsel %vm209_vm2, %v164_v16, %v231_v22 }
  0x89   :  { %v178_v17 = vpop.f32.mrf.mxu2  ;;  %v193_v18 = vpop.f32.mrf.mxu3 }
  0x8a   :  { %v150_v20 = vpop.f32.mrf.mxu0  ;;  %v165_v21 = vpop.f32.mrf.mxu1  ;;  %v194_v25 = vadd.f32 %v573_v12, %v193_v18  ;;  %v179_v29 = vadd.f32 %v573_v12, %v178_v17 }
  0x8b   :  { %v151_v23 = vadd.f32 %v573_v12, %v150_v20  ;;  %v166_v24 = vadd.f32 %v573_v12, %v165_v21 }
  0x8c   :  { %v243_v33 = vmul.f32 0.2, %v194_v25  ;;  %vm221_vm5 = vcmp.ge.f32.partialorder %v194_v25, 0.0  ;;  %v237_v38 = vmul.f32 0.2, %v179_v29  ;;  %vm215_vm6 = vcmp.ge.f32.partialorder %v179_v29, 0.0 }
  0x8d   :  { %vm204_vm3 = vcmp.ge.f32.partialorder %v151_v23, 0.0  ;;  %v226_v26 = vmul.f32 0.2, %v151_v23  ;;  %vm210_vm4 = vcmp.ge.f32.partialorder %v166_v24, 0.0  ;;  %v232_v27 = vmul.f32 0.2, %v166_v24 }
  0x8e   :  { %v265_v43 = vsel %vm221_vm5, %v194_v25, %v243_v33  ;;  %v259_v46 = vsel %vm215_vm6, %v179_v29, %v237_v38 }
  0x8f   :  { %v248_v31 = vsel %vm204_vm3, %v151_v23, %v226_v26  ;;  %v254_v32 = vsel %vm210_vm4, %v166_v24, %v232_v27 }
  0x90   :  { %v405_v34 = vpack.c.bf16 %v248_v31, %v247_v28  ;;  %v420_v35 = vpack.c.bf16 %v254_v32, %v253_v30 }
  0x91   :  { %v180_v36 = vpop.f32.mrf.mxu2  ;;  %v195_v37 = vpop.f32.mrf.mxu3 }
  0x92   :  { %406 = vst [vmem:[#allocation2] sm:$0xff] %v405_v34   ;;  %v181_v39 = vadd.f32 %v573_v12, %v180_v36  ;;  %v153_v40 = vpop.f32.mrf.mxu0  ;;  %v168_v41 = vpop.f32.mrf.mxu1  ;;  %v196_v42 = vadd.f32 %v573_v12, %v195_v37 }
  0x93   :  { %459 = vst [vmem:[#allocation2 + $0x18] sm:$0xff] %v420_v35   ;;  %v154_v48 = vadd.f32 %v573_v12, %v153_v40  ;;  %v169_v51 = vadd.f32 %v573_v12, %v168_v41 }
  0x94   :  { %vm216_vm7 = vcmp.ge.f32.partialorder %v181_v39, 0.0  ;;  %v238_v44 = vmul.f32 0.2, %v181_v39  ;;  %vm222_vm8 = vcmp.ge.f32.partialorder %v196_v42, 0.0  ;;  %v244_v45 = vmul.f32 0.2, %v196_v42 }
  0x95   :  { %vm205_vm9 = vcmp.ge.f32.partialorder %v154_v48, 0.0  ;;  %v227_v55 = vmul.f32 0.2, %v154_v48  ;;  %v233_v58 = vmul.f32 0.2, %v169_v51  ;;  %vm211_vm10 = vcmp.ge.f32.partialorder %v169_v51, 0.0 }
  0x96   :  { %v260_v47 = vsel %vm216_vm7, %v181_v39, %v238_v44  ;;  %v266_v49 = vsel %vm222_vm8, %v196_v42, %v244_v45 }
  0x97   :  { %v435_v50 = vpack.c.bf16 %v260_v47, %v259_v46  ;;  %v450_v52 = vpack.c.bf16 %v266_v49, %v265_v43  ;;  %v249_v0 = vsel %vm205_vm9, %v154_v48, %v227_v55  ;;  %v255_v2 = vsel %vm211_vm10, %v169_v51, %v233_v58 }
  0x99   :  { %462 = vst [vmem:[#allocation2 + $0x30] sm:$0xff] %v435_v50   ;;  %v183_v53 = vpop.f32.mrf.mxu2  ;;  %v198_v54 = vpop.f32.mrf.mxu3 }
  0x9a   :  { %465 = vst [vmem:[#allocation2 + $0x48] sm:$0xff] %v450_v52   ;;  %v155_v56 = vpop.f32.mrf.mxu0  ;;  %v170_v57 = vpop.f32.mrf.mxu1  ;;  %v199_v61 = vadd.f32 %v573_v12, %v198_v54  ;;  %v184_v1 = vadd.f32 %v573_v12, %v183_v53 }
  0x9b   :  { %v156_v59 = vadd.f32 %v573_v12, %v155_v56  ;;  %v171_v60 = vadd.f32 %v573_v12, %v170_v57 }
  0x9c   :  { %v245_v5 = vmul.f32 0.2, %v199_v61  ;;  %vm223_vm13 = vcmp.ge.f32.partialorder %v199_v61, 0.0  ;;  %v239_v10 = vmul.f32 0.2, %v184_v1  ;;  %vm217_vm14 = vcmp.ge.f32.partialorder %v184_v1, 0.0 }
  0x9d   :  { %vm206_vm11 = vcmp.ge.f32.partialorder %v156_v59, 0.0  ;;  %v228_v62 = vmul.f32 0.2, %v156_v59  ;;  %vm212_vm12 = vcmp.ge.f32.partialorder %v171_v60, 0.0  ;;  %v234_v63 = vmul.f32 0.2, %v171_v60 }
  0x9e   :  { %v267_v16 = vsel %vm223_vm13, %v199_v61, %v245_v5  ;;  %v261_v19 = vsel %vm217_vm14, %v184_v1, %v239_v10 }
  0x9f   :  { %v250_v3 = vsel %vm206_vm11, %v156_v59, %v228_v62  ;;  %v256_v4 = vsel %vm212_vm12, %v171_v60, %v234_v63 }
  0xa0   :  { %v410_v6 = vpack.c.bf16 %v250_v3, %v249_v0  ;;  %v425_v7 = vpack.c.bf16 %v256_v4, %v255_v2 }
  0xa1   :  { %v185_v8 = vpop.f32.mrf.mxu2  ;;  %v200_v9 = vpop.f32.mrf.mxu3 }
  0xa2   :  { %457 = vst [vmem:[#allocation2 + $0x8] sm:$0xff] %v410_v6   ;;  %v186_v11 = vadd.f32 %v573_v12, %v185_v8  ;;  %v158_v13 = vpop.f32.mrf.mxu0  ;;  %v173_v14 = vpop.f32.mrf.mxu1  ;;  %v201_v15 = vadd.f32 %v573_v12, %v200_v9 }
  0xa3   :  { %460 = vst [vmem:[#allocation2 + $0x20] sm:$0xff] %v425_v7   ;;  %v159_v23 = vadd.f32 %v573_v12, %v158_v13  ;;  %v174_v24 = vadd.f32 %v573_v12, %v173_v14 }
  0xa4   :  { %vm218_vm15 = vcmp.ge.f32.partialorder %v186_v11, 0.0  ;;  %v240_v17 = vmul.f32 0.2, %v186_v11  ;;  %vm224_vm0 = vcmp.ge.f32.partialorder %v201_v15, 0.0  ;;  %v246_v18 = vmul.f32 0.2, %v201_v15 }
  0xa5   :  { %v229_v29 = vmul.f32 0.2, %v159_v23  ;;  %v235_v30 = vmul.f32 0.2, %v174_v24  ;;  %vm207_vm1 = vcmp.ge.f32.partialorder %v159_v23, 0.0  ;;  %vm213_vm2 = vcmp.ge.f32.partialorder %v174_v24, 0.0 }
  0xa6   :  { %v262_v20 = vsel %vm218_vm15, %v186_v11, %v240_v17  ;;  %v268_v21 = vsel %vm224_vm0, %v201_v15, %v246_v18 }
  0xa7   :  { %v440_v22 = vpack.c.bf16 %v262_v20, %v261_v19  ;;  %v455_v25 = vpack.c.bf16 %v268_v21, %v267_v16  ;;  %v251_v36 = vsel %vm207_vm1, %v159_v23, %v229_v29  ;;  %v257_v37 = vsel %vm213_vm2, %v174_v24, %v235_v30 }
  0xa9   :  { %463 = vst [vmem:[#allocation2 + $0x38] sm:$0xff] %v440_v22   ;;  %v188_v26 = vpop.f32.mrf.mxu2 }
  0xaa   :  { %466 = vst [vmem:[#allocation2 + $0x50] sm:$0xff] %v455_v25   ;;  %v160_v27 = vpop.f32.mrf.mxu0  ;;  %v175_v28 = vpop.f32.mrf.mxu1  ;;  %v189_v35 = vadd.f32 %v573_v12, %v188_v26 }
  0xab   :  { %v161_v31 = vadd.f32 %v573_v12, %v160_v27  ;;  %v176_v32 = vadd.f32 %v573_v12, %v175_v28 }
  0xac   :  { %v241_v43 = vmul.f32 0.2, %v189_v35  ;;  %vm219_vm5 = vcmp.ge.f32.partialorder %v189_v35, 0.0 }
  0xad   :  { %vm208_vm3 = vcmp.ge.f32.partialorder %v161_v31, 0.0  ;;  %v230_v33 = vmul.f32 0.2, %v161_v31  ;;  %vm214_vm4 = vcmp.ge.f32.partialorder %v176_v32, 0.0  ;;  %v236_v34 = vmul.f32 0.2, %v176_v32 }
  0xae   :  { %v263_v46 = vsel %vm219_vm5, %v189_v35, %v241_v43 }
  0xaf   :  { %v252_v38 = vsel %vm208_vm3, %v161_v31, %v230_v33  ;;  %v258_v39 = vsel %vm214_vm4, %v176_v32, %v236_v34 }
  0xb0   :  { %v415_v40 = vpack.c.bf16 %v252_v38, %v251_v36  ;;  %v430_v41 = vpack.c.bf16 %v258_v39, %v257_v37 }
  0xb1   :  { %v190_v42 = vpop.f32.mrf.mxu2 }
  0xb2   :  { %458 = vst [vmem:[#allocation2 + $0x10] sm:$0xff] %v415_v40   ;;  %v191_v44 = vadd.f32 %v573_v12, %v190_v42 }
  0xb3   :  { %461 = vst [vmem:[#allocation2 + $0x28] sm:$0xff] %v430_v41  }
  0xb4   :  { %vm220_vm6 = vcmp.ge.f32.partialorder %v191_v44, 0.0  ;;  %v242_v45 = vmul.f32 0.2, %v191_v44 }
  0xb6   :  { %v264_v47 = vsel %vm220_vm6, %v191_v44, %v242_v45 }
  0xb7   :  { %v445_v48 = vpack.c.bf16 %v264_v47, %v263_v46 }
  0xb9   :  { %464 = vst [vmem:[#allocation2 + $0x40] sm:$0xff] %v445_v48  }
  0xba   :  { %325 = dma.vmem_to_hbm [thread:$0]  %s318_s2, 1408, %s320_s12, [#allocation3], %s501_s13, %s501_s13, %s502_s14  }
  0xbb   :  { %498 = dma.done.wait [#allocation3], 1408  }
  0xbc   :  { %499 = vsyncadd [#allocation3], 4294965888 }
  0xbd   :  { %330 = vsyncpa [#allocation3], 1 }

</bundles_post_ra>
